<compile_context>
chip_gen: v6e
topology: v6e:2x2x1
jax: 0.10.0
libtpu: 0.0.40
codegen_flags: <defaults>
</compile_context>

<pallas_src>
import functools
import math

import jax
import jax.numpy as jnp
from jax import lax
from jax.experimental import pallas as pl
from jax.experimental.pallas import tpu as pltpu


def _pick_tile(total, align, cap):
    """Largest multiple of `align` that divides `total` and is <= cap.
    Falls back to `total` (block == full dim is always layout-legal)."""
    best = 0
    t = align
    lim = min(total, cap)
    while t <= lim:
        if total % t == 0:
            best = t
        t += align
    return best if best > 0 else total


def _hard_loss_kernel(zr_ref, zct_ref, o_ref, simp_ref, sneg_ref, pos_ref, *,
                      batch_size, row_tile, col_tile, temperature, tau_plus, beta):
    B = batch_size
    TR = row_tile
    TC = col_tile
    inv_T = 1.0 / float(temperature)
    i = pl.program_id(0)          # row-tile axis ("parallel")
    j = pl.program_id(1)          # column-tile axis ("arbitrary", carries reduction)

    # ---- per-row-tile accumulators, re-initialized at the first column step ----
    @pl.when(j == 0)
    def _init():
        simp_ref[...] = jnp.zeros_like(simp_ref)
        sneg_ref[...] = jnp.zeros_like(sneg_ref)
        pos_ref[...] = jnp.zeros_like(pos_ref)

    # ---- one (TR, TC) block of the cosine-similarity matrix (MXU) ----
    cos = lax.dot_general(zr_ref[...], zct_ref[...],
                          (((1,), (0,)), ((), ())),
                          preferred_element_type=jnp.float32)          # (TR, TC)
    s = (cos - 1.0) * inv_T        # shifted similarity, <= 0 -> exp never overflows
    neg = jnp.exp(s)               # exp(sim - 1/T)

    # Masks from broadcast-compared iotas (no full int matrices, no modulo).
    rows = i * TR + lax.broadcasted_iota(jnp.int32, (TR, 1), 0)        # (TR, 1)
    cols = j * TC + lax.broadcasted_iota(jnp.int32, (1, TC), 1)        # (1, TC)
    partner = jnp.where(rows < B, rows + B, rows - B)                  # (TR, 1)
    is_partner = cols == partner                                       # (TR, TC)
    neg_mask = jnp.logical_and(cols != rows, jnp.logical_not(is_partner))

    # Importance weights imp = neg**beta (shift-consistent: exp(beta*s)).
    b = float(beta)
    if b == 1.0:
        imp = neg                                   # single-exp fast path
    elif b == 0.0:
        imp = jnp.ones_like(neg)
    elif b.is_integer() and 1.0 < b <= 4.0:
        imp = neg                                   # VPU multiplies instead of 2nd exp
        for _ in range(int(b) - 1):
            imp = imp * neg
    else:
        imp = jnp.exp(b * s)                        # general (non-integer) beta

    imp_m = jnp.where(neg_mask, imp, 0.0)
    simp_ref[...] += jnp.sum(imp_m, axis=-1, keepdims=True)            # sum(imp)
    sneg_ref[...] += jnp.sum(imp_m * neg, axis=-1, keepdims=True)      # sum(imp*neg)
    # pos = exp((cos(q_i,k_i) - 1)/T): each row's partner column lives in exactly
    # one column tile, so a masked row-reduce accumulates it exactly once.
    pos_ref[...] += jnp.sum(jnp.where(is_partner, neg, 0.0), axis=-1, keepdims=True)

    # ---- finalize this row tile on the last column step ----
    @pl.when(j == pl.num_programs(1) - 1)
    def _finalize():
        twoB = 2 * B
        N = 2.0 * (B - 1)
        pos = pos_ref[...]
        reweight = sneg_ref[...] * float(twoB - 2) / simp_ref[...]
        Ng = (-float(tau_plus) * N * pos + reweight) / (1.0 - float(tau_plus))
        # Shifted clamp floor: (N * e^{-1/T}) * e^{-1/T} = N * e^{-2/T}.
        Ng = jnp.maximum(Ng, N * math.exp(-2.0 * inv_T))
        o_ref[...] = -jnp.log(pos / (pos + Ng))                        # (TR, 1)


def hard_loss(q, k, *, temperature, tau_plus, beta,
              matmul_dtype=jnp.float32, row_tile=None, col_tile=None):
    """Pallas version of Hard(temperature, tau_plus, beta).forward(q, k)."""
    assert q.shape == k.shape and q.ndim == 2
    B, D = q.shape
    assert B >= 2, "need at least 2 samples for negatives"
    twoB = 2 * B

    # ---- wrapper-side prep (cheap one-time XLA ops, hoisted out of the kernel) ----
    qf = q.astype(jnp.float32)
    kf = k.astype(jnp.float32)
    qn = qf * lax.rsqrt(jnp.sum(qf * qf, axis=-1, keepdims=True))
    kn = kf * lax.rsqrt(jnp.sum(kf * kf, axis=-1, keepdims=True))
    zn = jnp.concatenate([qn, kn], axis=0)                             # (2B, D) f32

    # Zero-pad feature dim to a 128-lane boundary (zeros change neither norms nor cos).
    Dp = max(128, ((D + 127) // 128) * 128)
    if Dp != D:
        zn = jnp.pad(zn, ((0, 0), (0, Dp - D)))
    zn = zn.astype(matmul_dtype)
    znT = zn.T                                                          # (Dp, 2B), one-time transpose

    itemsize = jnp.dtype(matmul_dtype).itemsize
    sub_align = {4: 8, 2: 16, 1: 32}[itemsize]
    TR = row_tile if row_tile is not None else _pick_tile(twoB, sub_align, 256)
    TC = col_tile if col_tile is not None else _pick_tile(twoB, 128, 1024)
    assert twoB % TR == 0 and twoB % TC == 0, (TR, TC, twoB)

    kernel = functools.partial(
        _hard_loss_kernel,
        batch_size=B, row_tile=TR, col_tile=TC,
        temperature=float(temperature), tau_plus=float(tau_plus), beta=float(beta))

    est_vmem = (2 * (TR + TC) * Dp * itemsize      # double-buffered zn / znT tiles
                + (3 + 2) * TR * 128 * 4           # per-row scratch + out block (lane-padded)
                + 8 * TR * TC * 4                  # live (TR, TC) f32 temporaries
                + (4 << 20))                       # headroom
    vmem_limit = int(min(max(est_vmem, 16 << 20), 60 << 20))

    per_row = pl.pallas_call(
        kernel,
        out_shape=jax.ShapeDtypeStruct((twoB, 1), jnp.float32),
        grid_spec=pltpu.PrefetchScalarGridSpec(
            num_scalar_prefetch=0,
            grid=(twoB // TR, twoB // TC),
            in_specs=[pl.BlockSpec((TR, Dp), lambda i, j: (i, 0)),    # row tile of zn
                      pl.BlockSpec((Dp, TC), lambda i, j: (0, j))],   # col tile of zn^T
            out_specs=pl.BlockSpec((TR, 1), lambda i, j: (i, 0)),
            scratch_shapes=[pltpu.VMEM((TR, 1), jnp.float32),   # sum(imp)
                            pltpu.VMEM((TR, 1), jnp.float32),   # sum(imp*neg)
                            pltpu.VMEM((TR, 1), jnp.float32)]),  # pos
        compiler_params=pltpu.CompilerParams(
            # Row tiles are independent (own output block + per-tile scratch init)
            # -> "parallel" for v7x megacore; column axis carries the reduction.
            dimension_semantics=("parallel", "arbitrary"),
            vmem_limit_bytes=vmem_limit),
    )(zn, znT)

    # TODO(synk): the `m is not None` memory-bank path of Hard.forward is not implemented.
    return jnp.mean(per_row)


def hard_loss_ref(q, k, *, temperature, tau_plus, beta):
    """Pure-JAX reference mirroring the PyTorch forward (m=None path)."""
    B = q.shape[0]
    z = jnp.concatenate([q, k], axis=0).astype(jnp.float32)
    zn = z / jnp.linalg.norm(z, axis=-1, keepdims=True)
    sim = (zn @ zn.T) / temperature
    neg = jnp.exp(sim)

    rows = jnp.arange(2 * B)[:, None]
    cols = jnp.arange(2 * B)[None, :]
    mask = (rows % B) != (cols % B)

    qn = q / jnp.linalg.norm(q, axis=-1, keepdims=True)
    kn = k / jnp.linalg.norm(k, axis=-1, keepdims=True)
    pos = jnp.exp(jnp.sum(qn * kn, axis=-1) / temperature)
    pos = jnp.concatenate([pos, pos], axis=0)

    N = 2 * (B - 1)
    imp = jnp.where(mask, jnp.exp(beta * sim), 0.0)
    reweight_neg = jnp.sum(imp * jnp.where(mask, neg, 0.0), axis=-1) / (
        jnp.sum(imp, axis=-1) / (2 * B - 2)
    )
    Ng = (-tau_plus * N * pos + reweight_neg) / (1.0 - tau_plus)
    Ng = jnp.maximum(Ng, N * math.e ** (-1.0 / temperature))
    return jnp.mean(-jnp.log(pos / (pos + Ng)))


if __name__ == "__main__":
    temperature = 0.5
    tau_plus = 0.1

    key = jax.random.PRNGKey(0)
    kq, kk = jax.random.split(key)
    q = jax.random.normal(kq, (8, 32), dtype=jnp.float32)
    k = jax.random.normal(kk, (8, 32), dtype=jnp.float32)

    # f32 path: beta = 1 (single-exp), integer beta (VPU-power path), non-integer beta.
    for beta in (1.0, 2.0, 0.5):
        out = jax.block_until_ready(
            hard_loss(q, k, temperature=temperature, tau_plus=tau_plus, beta=beta))
        ref = hard_loss_ref(q, k, temperature=temperature, tau_plus=tau_plus, beta=beta)
        assert jnp.allclose(out, ref, rtol=1e-4, atol=1e-4), (beta, out, ref)

    # bf16 MXU path (f32 accumulation), looser tolerance.
    out = jax.block_until_ready(
        hard_loss(q, k, temperature=temperature, tau_plus=tau_plus, beta=1.0,
                  matmul_dtype=jnp.bfloat16))
    ref = hard_loss_ref(q, k, temperature=temperature, tau_plus=tau_plus, beta=1.0)
    assert jnp.allclose(out, ref, rtol=3e-2, atol=3e-2), (out, ref)

    # Multi-tile grid in both axes (2B=384 -> grid (6, 3)), feature dim padded 200->256.
    kq2, kk2 = jax.random.split(jax.random.PRNGKey(1))
    q2 = jax.random.normal(kq2, (192, 200), dtype=jnp.float32)
    k2 = jax.random.normal(kk2, (192, 200), dtype=jnp.float32)
    out = jax.block_until_ready(
        hard_loss(q2, k2, temperature=temperature, tau_plus=tau_plus, beta=1.0,
                  row_tile=64, col_tile=128))
    ref = hard_loss_ref(q2, k2, temperature=temperature, tau_plus=tau_plus, beta=1.0)
    assert jnp.allclose(out, ref, rtol=1e-3, atol=1e-3), (out, ref)

    print("KERNEL_OK")
</pallas_src>

<mosaic_0001>
module attributes {stable_mosaic.version = 11 : i64} {
  func.func @_hard_loss_kernel(%arg0: i32, %arg1: i32, %arg2: memref<16x128xf32, #tpu.memory_space<vmem>>, %arg3: memref<128x16xf32, #tpu.memory_space<vmem>>, %arg4: memref<16x1xf32, #tpu.memory_space<vmem>>, %arg5: memref<16x1xf32, #tpu.memory_space<vmem>>, %arg6: memref<16x1xf32, #tpu.memory_space<vmem>>, %arg7: memref<16x1xf32, #tpu.memory_space<vmem>>) attributes {dimension_semantics = [#tpu.dimension_semantics<parallel>, #tpu.dimension_semantics<arbitrary>], iteration_bounds = array<i64: 1, 1>, scalar_prefetch = 0 : i64, scratch_operands = 3 : i64, tpu.core_type = #tpu.core_type<tc>, window_params = [{transform_indices = @transform_0, window_bounds = array<i64: 16, 128>}, {transform_indices = @transform_1, window_bounds = array<i64: 128, 16>}, {transform_indices = @transform_2, window_bounds = array<i64: 16, 1>}]} {
    %c0_i32 = arith.constant 0 : i32
    %0 = arith.cmpi eq, %arg1, %c0_i32 : i32
    %1 = arith.extui %0 : i1 to i32
    %c0_i32_0 = arith.constant 0 : i32
    %2 = arith.cmpi ne, %1, %c0_i32_0 : i32
    scf.if %2 {
      %cst_29 = arith.constant 0.000000e+00 : f32
      %57 = vector.broadcast %cst_29 : f32 to vector<16x1xf32>
      %c0_30 = arith.constant 0 : index
      %c0_31 = arith.constant 0 : index
      %58 = vector.load %arg5[%c0_30, %c0_31] : memref<16x1xf32, #tpu.memory_space<vmem>>, vector<16x1xf32>
      tpu.vector_store %arg5[%c0_30, %c0_31], %57 {strides = array<i32>} : memref<16x1xf32, #tpu.memory_space<vmem>>, vector<16x1xf32>,
      %cst_32 = arith.constant 0.000000e+00 : f32
      %59 = vector.broadcast %cst_32 : f32 to vector<16x1xf32>
      %c0_33 = arith.constant 0 : index
      %c0_34 = arith.constant 0 : index
      %60 = vector.load %arg6[%c0_33, %c0_34] : memref<16x1xf32, #tpu.memory_space<vmem>>, vector<16x1xf32>
      tpu.vector_store %arg6[%c0_33, %c0_34], %59 {strides = array<i32>} : memref<16x1xf32, #tpu.memory_space<vmem>>, vector<16x1xf32>,
      %cst_35 = arith.constant 0.000000e+00 : f32
      %61 = vector.broadcast %cst_35 : f32 to vector<16x1xf32>
      %c0_36 = arith.constant 0 : index
      %c0_37 = arith.constant 0 : index
      %62 = vector.load %arg7[%c0_36, %c0_37] : memref<16x1xf32, #tpu.memory_space<vmem>>, vector<16x1xf32>
      tpu.vector_store %arg7[%c0_36, %c0_37], %61 {strides = array<i32>} : memref<16x1xf32, #tpu.memory_space<vmem>>, vector<16x1xf32>,
    } else {
    }
    %c0 = arith.constant 0 : index
    %c0_1 = arith.constant 0 : index
    %3 = vector.load %arg2[%c0, %c0_1] : memref<16x128xf32, #tpu.memory_space<vmem>>, vector<16x128xf32>
    %c0_2 = arith.constant 0 : index
    %c0_3 = arith.constant 0 : index
    %4 = vector.load %arg3[%c0_2, %c0_3] : memref<128x16xf32, #tpu.memory_space<vmem>>, vector<128x16xf32>
    %cst = arith.constant dense<0.000000e+00> : vector<16x16xf32>
    %5 = tpu.matmul %3, %4, %cst {dimension_numbers = #tpu.dot_dimension_numbers<[1], [0], [0], [1], [0, 0, 1, 1], [], []>} : vector<16x128xf32>, vector<128x16xf32>, vector<16x16xf32> -> vector<16x16xf32>
    %cst_4 = arith.constant 1.000000e+00 : f32
    %6 = vector.broadcast %cst_4 : f32 to vector<16x16xf32>
    %7 = arith.subf %5, %6 : vector<16x16xf32>
    %cst_5 = arith.constant 2.000000e+00 : f32
    %8 = vector.broadcast %cst_5 : f32 to vector<16x16xf32>
    %9 = arith.mulf %7, %8 : vector<16x16xf32>
    %10 = math.exp %9 : vector<16x16xf32>
    %c16_i32 = arith.constant 16 : i32
    %11 = arith.muli %arg0, %c16_i32 : i32
    %12 = tpu.iota {dimensions = array<i32: 0>} : vector<16x1xi32>
    %13 = vector.broadcast %11 : i32 to vector<16x1xi32>
    %14 = arith.addi %13, %12 : vector<16x1xi32>
    %c16_i32_6 = arith.constant 16 : i32
    %15 = arith.muli %arg1, %c16_i32_6 : i32
    %16 = tpu.iota {dimensions = array<i32: 1>} : vector<1x16xi32>
    %17 = vector.broadcast %15 : i32 to vector<1x16xi32>
    %18 = arith.addi %17, %16 : vector<1x16xi32>
    %c8_i32 = arith.constant 8 : i32
    %19 = vector.broadcast %c8_i32 : i32 to vector<16x1xi32>
    %20 = arith.cmpi slt, %14, %19 : vector<16x1xi32>
    %c8_i32_7 = arith.constant 8 : i32
    %21 = vector.broadcast %c8_i32_7 : i32 to vector<16x1xi32>
    %22 = arith.addi %14, %21 : vector<16x1xi32>
    %c8_i32_8 = arith.constant 8 : i32
    %23 = vector.broadcast %c8_i32_8 : i32 to vector<16x1xi32>
    %24 = arith.subi %14, %23 : vector<16x1xi32>
    %25 = arith.select %20, %22, %24 : vector<16x1xi1>, vector<16x1xi32>
    %26 = vector.broadcast %18 : vector<1x16xi32> to vector<16x16xi32>
    %27 = vector.broadcast %25 : vector<16x1xi32> to vector<16x16xi32>
    %28 = arith.cmpi eq, %26, %27 : vector<16x16xi32>
    %29 = vector.broadcast %18 : vector<1x16xi32> to vector<16x16xi32>
    %30 = vector.broadcast %14 : vector<16x1xi32> to vector<16x16xi32>
    %31 = arith.cmpi ne, %29, %30 : vector<16x16xi32>
    %cst_9 = arith.constant dense<true> : vector<16x16xi1>
    %32 = arith.xori %28, %cst_9 : vector<16x16xi1>
    %33 = arith.andi %31, %32 : vector<16x16xi1>
    %cst_10 = arith.constant 0.000000e+00 : f32
    %34 = vector.broadcast %cst_10 : f32 to vector<16x16xf32>
    %35 = arith.select %33, %10, %34 : vector<16x16xi1>, vector<16x16xf32>
    %c0_11 = arith.constant 0 : index
    %c0_12 = arith.constant 0 : index
    %36 = vector.load %arg5[%c0_11, %c0_12] : memref<16x1xf32, #tpu.memory_space<vmem>>, vector<16x1xf32>
    %cst_13 = arith.constant dense<0.000000e+00> : vector<16xf32>
    %37 = vector.multi_reduction <add>, %35, %cst_13 [1] : vector<16x16xf32> to vector<16xf32>
    %38 = vector.shape_cast %37 : vector<16xf32> to vector<16x1xf32>
    %39 = arith.addf %36, %38 : vector<16x1xf32>
    %c0_14 = arith.constant 0 : index
    %c0_15 = arith.constant 0 : index
    %40 = vector.load %arg5[%c0_14, %c0_15] : memref<16x1xf32, #tpu.memory_space<vmem>>, vector<16x1xf32>
    tpu.vector_store %arg5[%c0_14, %c0_15], %39 {strides = array<i32>} : memref<16x1xf32, #tpu.memory_space<vmem>>, vector<16x1xf32>,
    %c0_16 = arith.constant 0 : index
    %c0_17 = arith.constant 0 : index
    %41 = vector.load %arg6[%c0_16, %c0_17] : memref<16x1xf32, #tpu.memory_space<vmem>>, vector<16x1xf32>
    %42 = arith.mulf %35, %10 : vector<16x16xf32>
    %cst_18 = arith.constant dense<0.000000e+00> : vector<16xf32>
    %43 = vector.multi_reduction <add>, %42, %cst_18 [1] : vector<16x16xf32> to vector<16xf32>
    %44 = vector.shape_cast %43 : vector<16xf32> to vector<16x1xf32>
    %45 = arith.addf %41, %44 : vector<16x1xf32>
    %c0_19 = arith.constant 0 : index
    %c0_20 = arith.constant 0 : index
    %46 = vector.load %arg6[%c0_19, %c0_20] : memref<16x1xf32, #tpu.memory_space<vmem>>, vector<16x1xf32>
    tpu.vector_store %arg6[%c0_19, %c0_20], %45 {strides = array<i32>} : memref<16x1xf32, #tpu.memory_space<vmem>>, vector<16x1xf32>,
    %c0_21 = arith.constant 0 : index
    %c0_22 = arith.constant 0 : index
    %47 = vector.load %arg7[%c0_21, %c0_22] : memref<16x1xf32, #tpu.memory_space<vmem>>, vector<16x1xf32>
    %cst_23 = arith.constant 0.000000e+00 : f32
    %48 = vector.broadcast %cst_23 : f32 to vector<16x16xf32>
    %49 = arith.select %28, %10, %48 : vector<16x16xi1>, vector<16x16xf32>
    %cst_24 = arith.constant dense<0.000000e+00> : vector<16xf32>
    %50 = vector.multi_reduction <add>, %49, %cst_24 [1] : vector<16x16xf32> to vector<16xf32>
    %51 = vector.shape_cast %50 : vector<16xf32> to vector<16x1xf32>
    %52 = arith.addf %47, %51 : vector<16x1xf32>
    %c0_25 = arith.constant 0 : index
    %c0_26 = arith.constant 0 : index
    %53 = vector.load %arg7[%c0_25, %c0_26] : memref<16x1xf32, #tpu.memory_space<vmem>>, vector<16x1xf32>
    tpu.vector_store %arg7[%c0_25, %c0_26], %52 {strides = array<i32>} : memref<16x1xf32, #tpu.memory_space<vmem>>, vector<16x1xf32>,
    %c0_i32_27 = arith.constant 0 : i32
    %54 = arith.cmpi eq, %arg1, %c0_i32_27 : i32
    %55 = arith.extui %54 : i1 to i32
    %c0_i32_28 = arith.constant 0 : i32
    %56 = arith.cmpi ne, %55, %c0_i32_28 : i32
    scf.if %56 {
      %c0_29 = arith.constant 0 : index
      %c0_30 = arith.constant 0 : index
      %57 = vector.load %arg7[%c0_29, %c0_30] : memref<16x1xf32, #tpu.memory_space<vmem>>, vector<16x1xf32>
      %c0_31 = arith.constant 0 : index
      %c0_32 = arith.constant 0 : index
      %58 = vector.load %arg6[%c0_31, %c0_32] : memref<16x1xf32, #tpu.memory_space<vmem>>, vector<16x1xf32>
      %cst_33 = arith.constant 1.400000e+01 : f32
      %59 = vector.broadcast %cst_33 : f32 to vector<16x1xf32>
      %60 = arith.mulf %58, %59 : vector<16x1xf32>
      %c0_34 = arith.constant 0 : index
      %c0_35 = arith.constant 0 : index
      %61 = vector.load %arg5[%c0_34, %c0_35] : memref<16x1xf32, #tpu.memory_space<vmem>>, vector<16x1xf32>
      %62 = arith.divf %60, %61 : vector<16x1xf32>
      %cst_36 = arith.constant -1.400000e+00 : f32
      %63 = vector.broadcast %cst_36 : f32 to vector<16x1xf32>
      %64 = arith.mulf %63, %57 : vector<16x1xf32>
      %65 = arith.addf %64, %62 : vector<16x1xf32>
      %cst_37 = arith.constant 0.899999976 : f32
      %66 = vector.broadcast %cst_37 : f32 to vector<16x1xf32>
      %67 = arith.divf %65, %66 : vector<16x1xf32>
      %cst_38 = arith.constant 0.256418943 : f32
      %68 = vector.broadcast %cst_38 : f32 to vector<16x1xf32>
      %69 = arith.maximumf %67, %68 : vector<16x1xf32>
      %70 = arith.addf %57, %69 : vector<16x1xf32>
      %71 = arith.divf %57, %70 : vector<16x1xf32>
      %72 = math.log %71 : vector<16x1xf32>
      %cst_39 = arith.constant 0.000000e+00 : f32
      %73 = vector.broadcast %cst_39 : f32 to vector<16x1xf32>
      %74 = arith.subf %73, %72 : vector<16x1xf32>
      %c0_40 = arith.constant 0 : index
      %c0_41 = arith.constant 0 : index
      %75 = vector.load %arg4[%c0_40, %c0_41] : memref<16x1xf32, #tpu.memory_space<vmem>>, vector<16x1xf32>
      tpu.vector_store %arg4[%c0_40, %c0_41], %74 {strides = array<i32>} : memref<16x1xf32, #tpu.memory_space<vmem>>, vector<16x1xf32>,
    } else {
    }
    return
  }
  func.func @transform_0(%arg0: i32, %arg1: i32) -> (i32, i32) {
    %c0_i32 = arith.constant 0 : i32
    %c0_i32_0 = arith.constant 0 : i32
    return %arg0, %c0_i32 : i32, i32
  }
  func.func @transform_1(%arg0: i32, %arg1: i32) -> (i32, i32) {
    %c0_i32 = arith.constant 0 : i32
    %c0_i32_0 = arith.constant 0 : i32
    return %c0_i32, %arg1 : i32, i32
  }
  func.func @transform_2(%arg0: i32, %arg1: i32) -> (i32, i32) {
    %c0_i32 = arith.constant 0 : i32
    %c0_i32_0 = arith.constant 0 : i32
    return %arg0, %c0_i32 : i32, i32
  }
}

</mosaic_0001>

<bundles_post_ra>
// kernel: tpu_custom_call.1
= control target key start
LH: loop header
LB: loop body
LE: loop exit
PB: predicated region body
PF: predicated region fallthrough
CT: control target
= control target key end

     0   :  { %vm15_vm0 = vcmask 7168   ;;  %v312_v18 = vmov 0.0   ;;  %v124_v19 = vlaneseq  ;;  %vm313_vm4 = vmmov 1   ;;  %s407_s1 = inlined_call_operand.vmem [shape: f32[128,16], index: 1, kind: input, shape index: {}]   ;;  %s408_s0 = inlined_call_operand.vmem [shape: f32[16,128], index: 0, kind: input, shape index: {}]   ;;  %s409_s2 = inlined_call_operand.vmem [shape: f32[16,1], index: 2, kind: output, shape index: {}]  }
   0x1   :  { %v39_v0 = vld [vmem:[%s407_s1 + $0x78] sm:$0xff]  ;;  %v38_v1 = vld [vmem:[%s407_s1 + $0x70] sm:$0xff]  ;;  %v37_v2 = vld [vmem:[%s407_s1 + $0x68] sm:$0xff]  ;;  %19 = vst.msk [vmem:[#allocation3 + $0x8] sm:$0xff] %vm15_vm0, %v312_v18  ;;  %vm155_vm10 = vcmask 130048  }
   0x2   :  { %259 = vmatprep.subr.mxu0 %v39_v0  ;;  %v36_v3 = vld [vmem:[%s407_s1 + $0x60] sm:$0xff]  ;;  %v35_v5 = vld [vmem:[%s407_s1 + $0x58] sm:$0xff]  ;;  %v34_v6 = vld [vmem:[%s407_s1 + $0x50] sm:$0xff]  ;;  %16 = vst.msk [vmem:[#allocation2] sm:$0xff] %vm15_vm0, %v312_v18  ;;  %v125_v21 = vshrl.u32 %v124_v19, 7  ;;  %v132_v30 = vand.u32 127, %v124_v19 }
   0x3   :  { %260 = vmatpush3.msra.mxu0 %v39_v0  ;;  %v22_v4 = vld [vmem:[%s408_s0] sm:$0xff]  ;;  %v33_v7 = vld [vmem:[%s407_s1 + $0x48] sm:$0xff]  ;;  %v31_v9 = vld [vmem:[%s407_s1 + $0x38] sm:$0xff]  ;;  %17 = vst.msk [vmem:[#allocation2 + $0x8] sm:$0xff] %vm15_vm0, %v312_v18 }
   0x4   :  { %261 = vmatprep.subr.mxu0 %v38_v1  ;;  %291 = vmatprep.mubr.f32.mxu0 %v22_v4  ;;  %v32_v8 = vld [vmem:[%s407_s1 + $0x40] sm:$0xff]  ;;  %v30_v10 = vld [vmem:[%s407_s1 + $0x30] sm:$0xff]  ;;  %v29_v11 = vld [vmem:[%s407_s1 + $0x28] sm:$0xff]  ;;  %18 = vst.msk [vmem:[#allocation3] sm:$0xff] %vm15_vm0, %v312_v18  ;;  %v126_v26 = vadd.s32 8, %v125_v21  ;;  %vm145_vm6 = vcmp.ne.s32.totalorder %v132_v30, %v125_v21 }
   0x5   :  { %262 = vmatpush3.msra.mxu0 %v38_v1  ;;  %v28_v12 = vld [vmem:[%s407_s1 + $0x20] sm:$0xff]  ;;  %v27_v13 = vld [vmem:[%s407_s1 + $0x18] sm:$0xff]  ;;  %v26_v14 = vld [vmem:[%s407_s1 + $0x10] sm:$0xff]  ;;  %20 = vst.msk [vmem:[#allocation4] sm:$0xff] %vm15_vm0, %v312_v18 }
   0x6   :  { %263 = vmatprep.subr.mxu0 %v37_v2  ;;  %v25_v15 = vld [vmem:[%s407_s1 + $0x8] sm:$0xff]  ;;  %v24_v16 = vld [vmem:[%s407_s1] sm:$0xff]  ;;  %21 = vst.msk [vmem:[#allocation4 + $0x8] sm:$0xff] %vm15_vm0, %v312_v18  ;;  %v240_v31 = vadd.s32 4294967288, %v126_v26  ;;  %vm143_vm2 = vcmp.eq.s32.totalorder %v132_v30, %v126_v26  ;;  %vm146_vm3 = vcmp.ne.s32.totalorder %v132_v30, %v126_v26 }
   0x7   :  { %264 = vmatpush3.msra.mxu0 %v37_v2  ;;  %v23_v17 = vld [vmem:[%s408_s0 + $0x8] sm:$0xff]  ;;  %vm147_vm7 = vmxor %vm143_vm2, %vm313_vm4 }
   0x8   :  { %265 = vmatprep.subr.mxu0 %v36_v3  ;;  %vm144_vm1 = vcmp.eq.s32.totalorder %v132_v30, %v240_v31  ;;  %vm149_vm9 = vmand %vm145_vm6, %vm147_vm7  ;;  %v168_v46 = vld [vmem:[#allocation3 + $0x8] sm:$0xff] }
   0x9   :  { %266 = vmatpush3.msra.mxu0 %v36_v3  ;;  %vm148_vm5 = vmxor %vm144_vm1, %vm313_vm4  ;;  %v153_v47 = vld [vmem:[#allocation2] sm:$0xff] }
   0xa   :  { %267 = vmatprep.subr.mxu0 %v35_v5  ;;  %vm150_vm8 = vmand %vm146_vm3, %vm148_vm5  ;;  %v154_v53 = vld [vmem:[#allocation2 + $0x8] sm:$0xff] }
   0xb   :  { %268 = vmatpush3.msra.mxu0 %v35_v5  ;;  %v167_v52 = vld [vmem:[#allocation3] sm:$0xff] }
   0xc   :  { %269 = vmatprep.subr.mxu0 %v34_v6  ;;  %v181_v59 = vld [vmem:[#allocation4] sm:$0xff] }
   0xd   :  { %270 = vmatpush3.msra.mxu0 %v34_v6  ;;  %v182_v58 = vld [vmem:[#allocation4 + $0x8] sm:$0xff] }
   0xe   :  { %271 = vmatprep.subr.mxu0 %v33_v7 }
   0xf   :  { %272 = vmatpush3.msra.mxu0 %v33_v7 }
  0x10   :  { %273 = vmatprep.subr.mxu0 %v32_v8 }
  0x11   :  { %274 = vmatpush3.msra.mxu0 %v32_v8 }
  0x12   :  { %275 = vmatprep.subr.mxu0 %v31_v9 }
  0x13   :  { %276 = vmatpush3.msra.mxu0 %v31_v9 }
  0x14   :  { %277 = vmatprep.subr.mxu0 %v30_v10 }
  0x15   :  { %278 = vmatpush3.msra.mxu0 %v30_v10 }
  0x16   :  { %279 = vmatprep.subr.mxu0 %v29_v11 }
  0x17   :  { %280 = vmatpush3.msra.mxu0 %v29_v11 }
  0x18   :  { %281 = vmatprep.subr.mxu0 %v28_v12 }
  0x19   :  { %282 = vmatpush3.msra.mxu0 %v28_v12 }
  0x1a   :  { %283 = vmatprep.subr.mxu0 %v27_v13 }
  0x1b   :  { %284 = vmatpush3.msra.mxu0 %v27_v13 }
  0x1c   :  { %285 = vmatprep.subr.mxu0 %v26_v14 }
  0x1d   :  { %286 = vmatpush3.msra.mxu0 %v26_v14 }
  0x1e   :  { %287 = vmatprep.subr.mxu0 %v25_v15 }
  0x1f   :  { %288 = vmatpush3.msra.mxu0 %v25_v15 }
  0x20   :  { %289 = vmatprep.subr.mxu0 %v24_v16 }
  0x21   :  { %290 = vmatpush3.msra.mxu0 %v24_v16 }
  0x22   :  { %292 = vmatmul.mubr.f32.vlgmr.msra.gmra.mxu0 %v23_v17 }
  0xe2   :  { %v293_v20 = vpop.f32.mrf.mxu0 }
  0xe3   :  { %v238_v22 = vadd.f32 -1.0, %v293_v20 }
  0xe4   :  { %v106_v23 = vpop.f32.mrf.mxu0 }
  0xe5   :  { %v118_v24 = vmul.f32 2.0, %v238_v22  ;;  %v237_v25 = vadd.f32 -1.0, %v106_v23 }
  0xe7   :  { %v121_v27 = vmul.f32 1.442695, %v118_v24  ;;  %v117_v28 = vmul.f32 2.0, %v237_v25 }
  0xe9   :  { %296 = vpow2.f32 %v121_v27  ;;  %v119_v29 = vmul.f32 1.442695, %v117_v28 }
  0xeb   :  { %298 = vpow2.f32 %v119_v29 }
  0xf6   :  { %v297_v32 = vpop.eup %296 }
  0xf7   :  { %v152_v33 = vsel %vm150_vm8, %v297_v32, 0.0  ;;  %v184_v42 = vsel %vm144_vm1, %v297_v32, 0.0 }
  0xf8   :  { %v299_v34 = vpop.eup %298  ;;  %v170_v35 = vmul.f32 %v297_v32, %v152_v33  ;;  %v159_v41 = vsel %vm155_vm10, %v152_v33, 0.0  ;;  %v188_v44 = vsel %vm155_vm10, %v184_v42, 0.0 }
  0xf9   :  { %v151_v36 = vsel %vm149_vm9, %v299_v34, 0.0  ;;  %v183_v43 = vsel %vm143_vm2, %v299_v34, 0.0 }
  0xfa   :  { %v174_v37 = vsel %vm155_vm10, %v170_v35, 0.0  ;;  %v156_v38 = vsel %vm155_vm10, %v151_v36, 0.0  ;;  %v169_v39 = vmul.f32 %v299_v34, %v151_v36  ;;  %v185_v45 = vsel %vm155_vm10, %v183_v43, 0.0 }
  0xfb   :  { %175 = vadd.xlane.f32.xlu1 %v174_v37  ;;  %157 = vadd.xlane.f32.xlu0 %v156_v38 }
  0xfc   :  { %v171_v40 = vsel %vm155_vm10, %v169_v39, 0.0 }
  0xff   :  { %172 = vadd.xlane.f32.xlu1 %v171_v40  ;;  %160 = vadd.xlane.f32.xlu0 %v159_v41 }
 0x103   :  { %189 = vadd.xlane.f32.xlu1 %v188_v44  ;;  %186 = vadd.xlane.f32.xlu0 %v185_v45 }
 0x184   :  { %v176_v48 = vpop.xlane.xlu1 %175  ;;  %v158_v49 = vpop.xlane.xlu0 %157 }
 0x185   :  { %v178_v50 = vadd.f32 %v176_v48, %v168_v46  ;;  %v162_v51 = vadd.f32 %v158_v49, %v153_v47 }
 0x187   :  { %180 = vst.msk [vmem:[#allocation3 + $0x8] sm:$0xff] %vm15_vm0, %v178_v50  ;;  %165 = vst.msk [vmem:[#allocation2] sm:$0xff] %vm15_vm0, %v162_v51 }
 0x188   :  { %v173_v54 = vpop.xlane.xlu1 %172  ;;  %v161_v55 = vpop.xlane.xlu0 %160 }
 0x189   :  { %v177_v56 = vadd.f32 %v173_v54, %v167_v52  ;;  %v163_v57 = vadd.f32 %v161_v55, %v154_v53 }
 0x18b   :  { %179 = vst.msk [vmem:[#allocation3] sm:$0xff] %vm15_vm0, %v177_v56  ;;  %166 = vst.msk [vmem:[#allocation2 + $0x8] sm:$0xff] %vm15_vm0, %v163_v57 }
 0x18c   :  { %v190_v60 = vpop.xlane.xlu1 %189  ;;  %v187_v61 = vpop.xlane.xlu0 %186 }
 0x18d   :  { %v192_v62 = vadd.f32 %v190_v60, %v182_v58  ;;  %v191_v63 = vadd.f32 %v187_v61, %v181_v59 }
 0x18e   :  { %v204_v0 = vld [vmem:[#allocation2] sm:$0xff]  ;;  %v201_v6 = vld [vmem:[#allocation3 + $0x8] sm:$0xff] }
 0x18f   :  { %300 = vrcp.f32 %v204_v0  ;;  %194 = vst.msk [vmem:[#allocation4 + $0x8] sm:$0xff] %vm15_vm0, %v192_v62  ;;  %193 = vst.msk [vmem:[#allocation4] sm:$0xff] %vm15_vm0, %v191_v63  ;;  %v203_v10 = vmul.f32 14.0, %v201_v6 }
 0x192   :  { %v205_v1 = vld [vmem:[#allocation2 + $0x8] sm:$0xff]  ;;  %v200_v2 = vld [vmem:[#allocation3] sm:$0xff] }
 0x193   :  { %302 = vrcp.f32 %v205_v1  ;;  %v202_v4 = vmul.f32 14.0, %v200_v2 }
 0x196   :  { %v198_v3 = vld [vmem:[#allocation4] sm:$0xff]  ;;  %v199_v9 = vld [vmem:[#allocation4 + $0x8] sm:$0xff] }
 0x197   :  { %v210_v8 = vmul.f32 -1.4, %v198_v3  ;;  %v211_v14 = vmul.f32 -1.4, %v199_v9 }
 0x19c   :  { %v301_v5 = vpop.eup %300 }
 0x19d   :  { %v207_v7 = vmul.f32 %v301_v5, %v202_v4 }
 0x19f   :  { %v212_v11 = vadd.f32 %v210_v8, %v207_v7 }
 0x1a0   :  { %v303_v12 = vpop.eup %302 }
 0x1a1   :  { %v209_v13 = vmul.f32 %v303_v12, %v203_v10  ;;  %v215_v15 = vmul.f32 1.1111112, %v212_v11 }
 0x1a3   :  { %v213_v16 = vadd.f32 %v211_v14, %v209_v13  ;;  %v217_v17 = vmax.f32 %v215_v15, 0.25641894 }
 0x1a5   :  { %v216_v18 = vmul.f32 1.1111112, %v213_v16  ;;  %v219_v19 = vadd.f32 %v217_v17, %v198_v3 }
 0x1a7   :  { %v218_v20 = vmax.f32 %v216_v18, 0.25641894  ;;  %304 = vrcp.f32 %v219_v19 }
 0x1a9   :  { %v220_v21 = vadd.f32 %v218_v20, %v199_v9 }
 0x1ab   :  { %306 = vrcp.f32 %v220_v21 }
 0x1b4   :  { %v305_v22 = vpop.eup %304 }
 0x1b5   :  { %v222_v23 = vmul.f32 %v305_v22, %v198_v3 }
 0x1b7   :  { %308 = vlog2.f32 %v222_v23 }
 0x1b8   :  { %v307_v24 = vpop.eup %306 }
 0x1b9   :  { %v224_v25 = vmul.f32 %v307_v24, %v199_v9 }
 0x1bb   :  { %310 = vlog2.f32 %v224_v25 }
 0x1c4   :  { %v309_v26 = vpop.eup %308 }
 0x1c5   :  { %v226_v27 = vmul.f32 0.6931472, %v309_v26 }
 0x1c7   :  { %v229_v28 = vsub.f32 0.0, %v226_v27 }
 0x1c8   :  { %v311_v29 = vpop.eup %310 }
 0x1c9   :  { %v228_v30 = vmul.f32 0.6931472, %v311_v29  ;;  %231 = vst.msk [vmem:[%s409_s2] sm:$0xff] %vm15_vm0, %v229_v28 }
 0x1cb   :  { %v230_v31 = vsub.f32 0.0, %v228_v30 }
 0x1cd   :  { %232 = vst.msk [vmem:[%s409_s2 + $0x8] sm:$0xff] %vm15_vm0, %v230_v31 }

</bundles_post_ra>
